<compile_context>
chip_gen: v5e
topology: v5e:2x2
jax: 0.10.0
libtpu: 0.0.40
codegen_flags: <defaults>
</compile_context>

<pallas_src>
import math
from functools import partial

import jax
import jax.numpy as jnp
from jax.experimental import pallas as pl
from jax.experimental.pallas import tpu as pltpu


# ----------------------------- Pallas kernel --------------------------------

def _make_fused_kernel(n_heads, d_keys, d_values, scale):
    H, E, Dv = n_heads, d_keys, d_values

    def kernel(xq_ref, xk_ref, xv_ref,
               wq_ref, bq_ref, wk_ref, bk_ref, wv_ref,
               wo_ref, bo_ref,
               o_ref, attn_ref):
        # Merged-head projections: one lane-dense (., H*E) matmul each.
        # bq_ref / bk_ref already carry the folded positional-embedding term;
        # the value-projection bias is folded into bo_ref in the wrapper.
        q = jnp.dot(xq_ref[...], wq_ref[...],
                    preferred_element_type=jnp.float32) + bq_ref[...]
        k = jnp.dot(xk_ref[...], wk_ref[...],
                    preferred_element_type=jnp.float32) + bk_ref[...]
        v = jnp.dot(xv_ref[...], wv_ref[...],
                    preferred_element_type=jnp.float32)

        # Fold the softmax scale into Q once (cheaper than scaling (L,S) tiles).
        q = q * scale

        out_acc = jnp.zeros(o_ref.shape, jnp.float32)      # (L, D) accumulator
        attn_parts = []
        for h in range(H):                                  # static unroll over heads
            qh = q[:, h * E:(h + 1) * E]                    # (L, E)
            kh = k[:, h * E:(h + 1) * E]                    # (S, E)
            vh = v[:, h * Dv:(h + 1) * Dv]                  # (S, Dv)

            # Q @ K^T: contract E on both operands, no materialized transpose.
            s = jax.lax.dot_general(
                qh, kh,
                dimension_numbers=(((1,), (1,)), ((), ())),
                preferred_element_type=jnp.float32)         # (L, S)

            m = jnp.max(s, axis=-1, keepdims=True)
            e = jnp.exp(s - m)
            a = e / jnp.sum(e, axis=-1, keepdims=True)      # exact softmax
            attn_parts.append(a)

            # Per-head context folded straight into the output projection:
            #   out += (A_h @ V_h) @ W_o[h*Dv:(h+1)*Dv, :]
            # (static sublane slice of W_o; no (L, H*Dv) concat needed).
            ctx_h = jnp.dot(a, vh, preferred_element_type=jnp.float32)
            out_acc = out_acc + jnp.dot(
                ctx_h, wo_ref[h * Dv:(h + 1) * Dv, :],
                preferred_element_type=jnp.float32)

        # Single lane-dense store of all H attention matrices: (L, H*S).
        attn_ref[...] = jnp.concatenate(attn_parts, axis=-1)
        # Single lane-dense store of the projected output: (L, D).
        o_ref[...] = out_acc + bo_ref[...]

    return kernel


# ----------------------------- Module glue ----------------------------------

def fixed_abs_pos_embedding(seq_len, hidden_size):
    # embeddings = cat(sin(pos * inv_freq), cos(pos * inv_freq)), dim=-1
    inv_freq = 1.0 / (
        10000.0 ** (jnp.arange(0, hidden_size, 2, dtype=jnp.float32) / hidden_size)
    )
    position = jnp.arange(seq_len, dtype=jnp.float32)
    sinusoid = position[:, None] * inv_freq[None, :]
    return jnp.concatenate([jnp.sin(sinusoid), jnp.cos(sinusoid)], axis=-1)  # (seq, d)


def init_params(key, d_model, n_heads):
    d_keys = d_model // n_heads
    d_values = d_model // n_heads

    def lin_init(k, din, dout):
        kw, kb = jax.random.split(k)
        bound = 1.0 / math.sqrt(din)
        w = jax.random.uniform(kw, (din, dout), jnp.float32, -bound, bound)
        b = jax.random.uniform(kb, (1, dout), jnp.float32, -bound, bound)
        return w, b

    k1, k2, k3, k4 = jax.random.split(key, 4)
    return {
        "wq": lin_init(k1, d_model, d_keys * n_heads),
        "wk": lin_init(k2, d_model, d_keys * n_heads),
        "wv": lin_init(k3, d_model, d_values * n_heads),
        "wo": lin_init(k4, d_values * n_heads, d_model),
    }


@partial(jax.jit, static_argnames=("n_heads",))
def attention_layer_emb_test_forward(params, queries, keys, values, *, n_heads):
    B, L, D = queries.shape
    _, S, _ = keys.shape
    H = n_heads

    wq, bq = params["wq"]
    wk, bk = params["wk"]
    wv, bv = params["wv"]
    wo, bo = params["wo"]

    HE = wq.shape[1]
    HDv = wv.shape[1]
    E = HE // H
    Dv = HDv // H

    hi = jax.lax.Precision.HIGHEST
    # Fold the additive fixed positional embedding into the Q/K projection biases:
    #   (x + pe) @ W + b == x @ W + (pe @ W + b)
    bq_eff = jnp.dot(fixed_abs_pos_embedding(L, D), wq, precision=hi) + bq   # (L, HE)
    bk_eff = jnp.dot(fixed_abs_pos_embedding(S, D), wk, precision=hi) + bk   # (S, HE)
    # Fold the V bias through the output projection (softmax rows sum to 1,
    # valid because the kernel uses an exact reciprocal):
    #   A_h @ (x@Wv + bv)_h == A_h @ (x@Wv)_h + bv_h  =>  bo_eff = bv @ Wo + bo
    bo_eff = jnp.dot(bv, wo, precision=hi) + bo                              # (1, D)

    kernel = _make_fused_kernel(H, E, Dv, 1.0 / math.sqrt(E))

    out, attn_flat = pl.pallas_call(
        kernel,
        out_shape=(
            jax.ShapeDtypeStruct((B, L, D), jnp.float32),
            jax.ShapeDtypeStruct((B, L, H * S), jnp.float32),
        ),
        grid=(B,),
        in_specs=[
            pl.BlockSpec((None, L, D), lambda b: (b, 0, 0)),   # queries
            pl.BlockSpec((None, S, D), lambda b: (b, 0, 0)),   # keys
            pl.BlockSpec((None, S, D), lambda b: (b, 0, 0)),   # values
            pl.BlockSpec((D, HE), lambda b: (0, 0)),           # wq
            pl.BlockSpec((L, HE), lambda b: (0, 0)),           # bq_eff (PE folded)
            pl.BlockSpec((D, HE), lambda b: (0, 0)),           # wk
            pl.BlockSpec((S, HE), lambda b: (0, 0)),           # bk_eff (PE folded)
            pl.BlockSpec((D, HDv), lambda b: (0, 0)),          # wv
            pl.BlockSpec((HDv, D), lambda b: (0, 0)),          # wo
            pl.BlockSpec((1, D), lambda b: (0, 0)),            # bo_eff (bv folded)
        ],
        out_specs=(
            pl.BlockSpec((None, L, D), lambda b: (b, 0, 0)),        # out
            pl.BlockSpec((None, L, H * S), lambda b: (b, 0, 0)),    # attn (lane-dense)
        ),
        compiler_params=pltpu.CompilerParams(
            dimension_semantics=("parallel",),        # v7x: one batch per TensorCore
            vmem_limit_bytes=32 * 1024 * 1024,        # explicit; v7x has 64 MiB VMEM
        ),
    )(queries, keys, values, wq, bq_eff, wk, bk_eff, wv, wo, bo_eff)

    # (B, L, H*S) -> (B, H, L, S): matches torch einsum('blhe,bshe->bhls') layout.
    attn = attn_flat.reshape(B, L, H, S).transpose(0, 2, 1, 3)
    return out, attn


# ----------------------------- Pure-JAX reference ----------------------------

def reference_forward(params, queries, keys, values, n_heads):
    B, L, D = queries.shape
    _, S, _ = keys.shape
    H = n_heads
    wq, bq = params["wq"]
    wk, bk = params["wk"]
    wv, bv = params["wv"]
    wo, bo = params["wo"]

    q = (queries + fixed_abs_pos_embedding(L, D)[None]) @ wq + bq
    k = (keys + fixed_abs_pos_embedding(S, D)[None]) @ wk + bk
    v = values @ wv + bv

    E = q.shape[-1] // H
    Dv = v.shape[-1] // H
    q = q.reshape(B, L, H, E)
    k = k.reshape(B, S, H, E)
    v = v.reshape(B, S, H, Dv)

    scores = jnp.einsum("blhe,bshe->bhls", q, k) / math.sqrt(E)
    a = jax.nn.softmax(scores, axis=-1)
    ctx = jnp.einsum("bhls,bshd->blhd", a, v).reshape(B, L, H * Dv)
    return ctx @ wo + bo, a


# ----------------------------- Main ------------------------------------------

if __name__ == "__main__":
    B, L, S = 2, 8, 8
    d_model, n_heads = 32, 4

    key = jax.random.PRNGKey(0)
    kp, kq, kk, kv = jax.random.split(key, 4)

    params = init_params(kp, d_model, n_heads)
    queries = jax.random.normal(kq, (B, L, d_model), jnp.float32)
    keys = jax.random.normal(kk, (B, S, d_model), jnp.float32)
    values = jax.random.normal(kv, (B, S, d_model), jnp.float32)

    out, attn = attention_layer_emb_test_forward(
        params, queries, keys, values, n_heads=n_heads)
    jax.block_until_ready((out, attn))

    assert out.shape == (B, L, d_model)
    assert attn.shape == (B, n_heads, L, S)

    # Numerical parity vs a pure-JAX reference.  Tolerance tightened (2e-2 ->
    # 1e-3) now that the softmax uses an exact reciprocal.
    with jax.default_matmul_precision("float32"):
        out_expected, attn_expected = reference_forward(
            params, queries, keys, values, n_heads)
    assert jnp.allclose(out, out_expected, rtol=1e-3, atol=1e-3), "out mismatch"
    assert jnp.allclose(attn, attn_expected, rtol=1e-3, atol=1e-3), "attn mismatch"

    print("KERNEL_OK")
</pallas_src>

<mosaic_0001>
module attributes {stable_mosaic.version = 11 : i64} {
  func.func @kernel(%arg0: i32, %arg1: memref<1x8x32xf32, #tpu.memory_space<vmem>>, %arg2: memref<1x8x32xf32, #tpu.memory_space<vmem>>, %arg3: memref<1x8x32xf32, #tpu.memory_space<vmem>>, %arg4: memref<32x32xf32, #tpu.memory_space<vmem>>, %arg5: memref<8x32xf32, #tpu.memory_space<vmem>>, %arg6: memref<32x32xf32, #tpu.memory_space<vmem>>, %arg7: memref<8x32xf32, #tpu.memory_space<vmem>>, %arg8: memref<32x32xf32, #tpu.memory_space<vmem>>, %arg9: memref<32x32xf32, #tpu.memory_space<vmem>>, %arg10: memref<1x32xf32, #tpu.memory_space<vmem>>, %arg11: memref<1x8x32xf32, #tpu.memory_space<vmem>>, %arg12: memref<1x8x32xf32, #tpu.memory_space<vmem>>) attributes {dimension_semantics = [#tpu.dimension_semantics<parallel>], iteration_bounds = array<i64: 2>, scalar_prefetch = 0 : i64, scratch_operands = 0 : i64, tpu.core_type = #tpu.core_type<tc>, window_params = [{transform_indices = @transform_0, window_bounds = array<i64: 1, 8, 32>}, {transform_indices = @transform_1, window_bounds = array<i64: 1, 8, 32>}, {transform_indices = @transform_2, window_bounds = array<i64: 1, 8, 32>}, {pipeline_mode = #tpu.pipeline_mode<synchronous>, transform_indices = @transform_3, window_bounds = array<i64: 32, 32>}, {pipeline_mode = #tpu.pipeline_mode<synchronous>, transform_indices = @transform_4, window_bounds = array<i64: 8, 32>}, {pipeline_mode = #tpu.pipeline_mode<synchronous>, transform_indices = @transform_5, window_bounds = array<i64: 32, 32>}, {pipeline_mode = #tpu.pipeline_mode<synchronous>, transform_indices = @transform_6, window_bounds = array<i64: 8, 32>}, {pipeline_mode = #tpu.pipeline_mode<synchronous>, transform_indices = @transform_7, window_bounds = array<i64: 32, 32>}, {pipeline_mode = #tpu.pipeline_mode<synchronous>, transform_indices = @transform_8, window_bounds = array<i64: 32, 32>}, {pipeline_mode = #tpu.pipeline_mode<synchronous>, transform_indices = @transform_9, window_bounds = array<i64: 1, 32>}, {transform_indices = @transform_10, window_bounds = array<i64: 1, 8, 32>}, {transform_indices = @transform_11, window_bounds = array<i64: 1, 8, 32>}]} {
    %c0 = arith.constant 0 : index
    %c0_0 = arith.constant 0 : index
    %c0_1 = arith.constant 0 : index
    %0 = vector.load %arg1[%c0, %c0_0, %c0_1] : memref<1x8x32xf32, #tpu.memory_space<vmem>>, vector<1x8x32xf32>
    %1 = vector.shape_cast %0 : vector<1x8x32xf32> to vector<8x32xf32>
    %c0_2 = arith.constant 0 : index
    %c0_3 = arith.constant 0 : index
    %2 = vector.load %arg4[%c0_2, %c0_3] : memref<32x32xf32, #tpu.memory_space<vmem>>, vector<32x32xf32>
    %cst = arith.constant dense<0.000000e+00> : vector<8x32xf32>
    %3 = tpu.matmul %1, %2, %cst {dimension_numbers = #tpu.dot_dimension_numbers<[1], [0], [0], [1], [0, 0, 1, 1], [], []>} : vector<8x32xf32>, vector<32x32xf32>, vector<8x32xf32> -> vector<8x32xf32>
    %c0_4 = arith.constant 0 : index
    %c0_5 = arith.constant 0 : index
    %4 = vector.load %arg5[%c0_4, %c0_5] : memref<8x32xf32, #tpu.memory_space<vmem>>, vector<8x32xf32>
    %5 = arith.addf %3, %4 : vector<8x32xf32>
    %c0_6 = arith.constant 0 : index
    %c0_7 = arith.constant 0 : index
    %c0_8 = arith.constant 0 : index
    %6 = vector.load %arg2[%c0_6, %c0_7, %c0_8] : memref<1x8x32xf32, #tpu.memory_space<vmem>>, vector<1x8x32xf32>
    %7 = vector.shape_cast %6 : vector<1x8x32xf32> to vector<8x32xf32>
    %c0_9 = arith.constant 0 : index
    %c0_10 = arith.constant 0 : index
    %8 = vector.load %arg6[%c0_9, %c0_10] : memref<32x32xf32, #tpu.memory_space<vmem>>, vector<32x32xf32>
    %cst_11 = arith.constant dense<0.000000e+00> : vector<8x32xf32>
    %9 = tpu.matmul %7, %8, %cst_11 {dimension_numbers = #tpu.dot_dimension_numbers<[1], [0], [0], [1], [0, 0, 1, 1], [], []>} : vector<8x32xf32>, vector<32x32xf32>, vector<8x32xf32> -> vector<8x32xf32>
    %c0_12 = arith.constant 0 : index
    %c0_13 = arith.constant 0 : index
    %10 = vector.load %arg7[%c0_12, %c0_13] : memref<8x32xf32, #tpu.memory_space<vmem>>, vector<8x32xf32>
    %11 = arith.addf %9, %10 : vector<8x32xf32>
    %c0_14 = arith.constant 0 : index
    %c0_15 = arith.constant 0 : index
    %c0_16 = arith.constant 0 : index
    %12 = vector.load %arg3[%c0_14, %c0_15, %c0_16] : memref<1x8x32xf32, #tpu.memory_space<vmem>>, vector<1x8x32xf32>
    %13 = vector.shape_cast %12 : vector<1x8x32xf32> to vector<8x32xf32>
    %c0_17 = arith.constant 0 : index
    %c0_18 = arith.constant 0 : index
    %14 = vector.load %arg8[%c0_17, %c0_18] : memref<32x32xf32, #tpu.memory_space<vmem>>, vector<32x32xf32>
    %cst_19 = arith.constant dense<0.000000e+00> : vector<8x32xf32>
    %15 = tpu.matmul %13, %14, %cst_19 {dimension_numbers = #tpu.dot_dimension_numbers<[1], [0], [0], [1], [0, 0, 1, 1], [], []>} : vector<8x32xf32>, vector<32x32xf32>, vector<8x32xf32> -> vector<8x32xf32>
    %cst_20 = arith.constant 0.353553385 : f32
    %16 = vector.broadcast %cst_20 : f32 to vector<8x32xf32>
    %17 = arith.mulf %5, %16 : vector<8x32xf32>
    %cst_21 = arith.constant 0.000000e+00 : f32
    %18 = vector.broadcast %cst_21 : f32 to vector<8x32xf32>
    %19 = vector.extract_strided_slice %17 {offsets = [0, 0], sizes = [8, 8], strides = [1, 1]} : vector<8x32xf32> to vector<8x8xf32>
    %20 = vector.extract_strided_slice %11 {offsets = [0, 0], sizes = [8, 8], strides = [1, 1]} : vector<8x32xf32> to vector<8x8xf32>
    %21 = vector.extract_strided_slice %15 {offsets = [0, 0], sizes = [8, 8], strides = [1, 1]} : vector<8x32xf32> to vector<8x8xf32>
    %cst_22 = arith.constant dense<0.000000e+00> : vector<8x8xf32>
    %22 = tpu.matmul %19, %20, %cst_22 {dimension_numbers = #tpu.dot_dimension_numbers<[1], [1], [0], [0], [0, 0, 1, 0], [], []>} : vector<8x8xf32>, vector<8x8xf32>, vector<8x8xf32> -> vector<8x8xf32>
    %cst_23 = arith.constant dense<0xFF800000> : vector<8xf32>
    %23 = vector.multi_reduction <maximumf>, %22, %cst_23 [1] : vector<8x8xf32> to vector<8xf32>
    %24 = vector.shape_cast %23 : vector<8xf32> to vector<8x1xf32>
    %25 = vector.broadcast %24 : vector<8x1xf32> to vector<8x8xf32>
    %26 = arith.subf %22, %25 : vector<8x8xf32>
    %27 = math.exp %26 : vector<8x8xf32>
    %cst_24 = arith.constant dense<0.000000e+00> : vector<8xf32>
    %28 = vector.multi_reduction <add>, %27, %cst_24 [1] : vector<8x8xf32> to vector<8xf32>
    %29 = vector.shape_cast %28 : vector<8xf32> to vector<8x1xf32>
    %30 = vector.broadcast %29 : vector<8x1xf32> to vector<8x8xf32>
    %31 = arith.divf %27, %30 : vector<8x8xf32>
    %cst_25 = arith.constant dense<0.000000e+00> : vector<8x8xf32>
    %32 = tpu.matmul %31, %21, %cst_25 {dimension_numbers = #tpu.dot_dimension_numbers<[1], [0], [0], [1], [0, 0, 1, 1], [], []>} : vector<8x8xf32>, vector<8x8xf32>, vector<8x8xf32> -> vector<8x8xf32>
    %c0_26 = arith.constant 0 : index
    %c0_27 = arith.constant 0 : index
    %33 = vector.load %arg9[%c0_26, %c0_27] : memref<32x32xf32, #tpu.memory_space<vmem>>, vector<8x32xf32>
    %cst_28 = arith.constant dense<0.000000e+00> : vector<8x32xf32>
    %34 = tpu.matmul %32, %33, %cst_28 {dimension_numbers = #tpu.dot_dimension_numbers<[1], [0], [0], [1], [0, 0, 1, 1], [], []>} : vector<8x8xf32>, vector<8x32xf32>, vector<8x32xf32> -> vector<8x32xf32>
    %35 = arith.addf %18, %34 : vector<8x32xf32>
    %36 = vector.extract_strided_slice %17 {offsets = [0, 8], sizes = [8, 8], strides = [1, 1]} : vector<8x32xf32> to vector<8x8xf32>
    %37 = vector.extract_strided_slice %11 {offsets = [0, 8], sizes = [8, 8], strides = [1, 1]} : vector<8x32xf32> to vector<8x8xf32>
    %38 = vector.extract_strided_slice %15 {offsets = [0, 8], sizes = [8, 8], strides = [1, 1]} : vector<8x32xf32> to vector<8x8xf32>
    %cst_29 = arith.constant dense<0.000000e+00> : vector<8x8xf32>
    %39 = tpu.matmul %36, %37, %cst_29 {dimension_numbers = #tpu.dot_dimension_numbers<[1], [1], [0], [0], [0, 0, 1, 0], [], []>} : vector<8x8xf32>, vector<8x8xf32>, vector<8x8xf32> -> vector<8x8xf32>
    %cst_30 = arith.constant dense<0xFF800000> : vector<8xf32>
    %40 = vector.multi_reduction <maximumf>, %39, %cst_30 [1] : vector<8x8xf32> to vector<8xf32>
    %41 = vector.shape_cast %40 : vector<8xf32> to vector<8x1xf32>
    %42 = vector.broadcast %41 : vector<8x1xf32> to vector<8x8xf32>
    %43 = arith.subf %39, %42 : vector<8x8xf32>
    %44 = math.exp %43 : vector<8x8xf32>
    %cst_31 = arith.constant dense<0.000000e+00> : vector<8xf32>
    %45 = vector.multi_reduction <add>, %44, %cst_31 [1] : vector<8x8xf32> to vector<8xf32>
    %46 = vector.shape_cast %45 : vector<8xf32> to vector<8x1xf32>
    %47 = vector.broadcast %46 : vector<8x1xf32> to vector<8x8xf32>
    %48 = arith.divf %44, %47 : vector<8x8xf32>
    %cst_32 = arith.constant dense<0.000000e+00> : vector<8x8xf32>
    %49 = tpu.matmul %48, %38, %cst_32 {dimension_numbers = #tpu.dot_dimension_numbers<[1], [0], [0], [1], [0, 0, 1, 1], [], []>} : vector<8x8xf32>, vector<8x8xf32>, vector<8x8xf32> -> vector<8x8xf32>
    %c8 = arith.constant 8 : index
    %c0_33 = arith.constant 0 : index
    %50 = vector.load %arg9[%c8, %c0_33] : memref<32x32xf32, #tpu.memory_space<vmem>>, vector<8x32xf32>
    %cst_34 = arith.constant dense<0.000000e+00> : vector<8x32xf32>
    %51 = tpu.matmul %49, %50, %cst_34 {dimension_numbers = #tpu.dot_dimension_numbers<[1], [0], [0], [1], [0, 0, 1, 1], [], []>} : vector<8x8xf32>, vector<8x32xf32>, vector<8x32xf32> -> vector<8x32xf32>
    %52 = arith.addf %35, %51 : vector<8x32xf32>
    %53 = vector.extract_strided_slice %17 {offsets = [0, 16], sizes = [8, 8], strides = [1, 1]} : vector<8x32xf32> to vector<8x8xf32>
    %54 = vector.extract_strided_slice %11 {offsets = [0, 16], sizes = [8, 8], strides = [1, 1]} : vector<8x32xf32> to vector<8x8xf32>
    %55 = vector.extract_strided_slice %15 {offsets = [0, 16], sizes = [8, 8], strides = [1, 1]} : vector<8x32xf32> to vector<8x8xf32>
    %cst_35 = arith.constant dense<0.000000e+00> : vector<8x8xf32>
    %56 = tpu.matmul %53, %54, %cst_35 {dimension_numbers = #tpu.dot_dimension_numbers<[1], [1], [0], [0], [0, 0, 1, 0], [], []>} : vector<8x8xf32>, vector<8x8xf32>, vector<8x8xf32> -> vector<8x8xf32>
    %cst_36 = arith.constant dense<0xFF800000> : vector<8xf32>
    %57 = vector.multi_reduction <maximumf>, %56, %cst_36 [1] : vector<8x8xf32> to vector<8xf32>
    %58 = vector.shape_cast %57 : vector<8xf32> to vector<8x1xf32>
    %59 = vector.broadcast %58 : vector<8x1xf32> to vector<8x8xf32>
    %60 = arith.subf %56, %59 : vector<8x8xf32>
    %61 = math.exp %60 : vector<8x8xf32>
    %cst_37 = arith.constant dense<0.000000e+00> : vector<8xf32>
    %62 = vector.multi_reduction <add>, %61, %cst_37 [1] : vector<8x8xf32> to vector<8xf32>
    %63 = vector.shape_cast %62 : vector<8xf32> to vector<8x1xf32>
    %64 = vector.broadcast %63 : vector<8x1xf32> to vector<8x8xf32>
    %65 = arith.divf %61, %64 : vector<8x8xf32>
    %cst_38 = arith.constant dense<0.000000e+00> : vector<8x8xf32>
    %66 = tpu.matmul %65, %55, %cst_38 {dimension_numbers = #tpu.dot_dimension_numbers<[1], [0], [0], [1], [0, 0, 1, 1], [], []>} : vector<8x8xf32>, vector<8x8xf32>, vector<8x8xf32> -> vector<8x8xf32>
    %c16 = arith.constant 16 : index
    %c0_39 = arith.constant 0 : index
    %67 = vector.load %arg9[%c16, %c0_39] : memref<32x32xf32, #tpu.memory_space<vmem>>, vector<8x32xf32>
    %cst_40 = arith.constant dense<0.000000e+00> : vector<8x32xf32>
    %68 = tpu.matmul %66, %67, %cst_40 {dimension_numbers = #tpu.dot_dimension_numbers<[1], [0], [0], [1], [0, 0, 1, 1], [], []>} : vector<8x8xf32>, vector<8x32xf32>, vector<8x32xf32> -> vector<8x32xf32>
    %69 = arith.addf %52, %68 : vector<8x32xf32>
    %70 = vector.extract_strided_slice %17 {offsets = [0, 24], sizes = [8, 8], strides = [1, 1]} : vector<8x32xf32> to vector<8x8xf32>
    %71 = vector.extract_strided_slice %11 {offsets = [0, 24], sizes = [8, 8], strides = [1, 1]} : vector<8x32xf32> to vector<8x8xf32>
    %72 = vector.extract_strided_slice %15 {offsets = [0, 24], sizes = [8, 8], strides = [1, 1]} : vector<8x32xf32> to vector<8x8xf32>
    %cst_41 = arith.constant dense<0.000000e+00> : vector<8x8xf32>
    %73 = tpu.matmul %70, %71, %cst_41 {dimension_numbers = #tpu.dot_dimension_numbers<[1], [1], [0], [0], [0, 0, 1, 0], [], []>} : vector<8x8xf32>, vector<8x8xf32>, vector<8x8xf32> -> vector<8x8xf32>
    %cst_42 = arith.constant dense<0xFF800000> : vector<8xf32>
    %74 = vector.multi_reduction <maximumf>, %73, %cst_42 [1] : vector<8x8xf32> to vector<8xf32>
    %75 = vector.shape_cast %74 : vector<8xf32> to vector<8x1xf32>
    %76 = vector.broadcast %75 : vector<8x1xf32> to vector<8x8xf32>
    %77 = arith.subf %73, %76 : vector<8x8xf32>
    %78 = math.exp %77 : vector<8x8xf32>
    %cst_43 = arith.constant dense<0.000000e+00> : vector<8xf32>
    %79 = vector.multi_reduction <add>, %78, %cst_43 [1] : vector<8x8xf32> to vector<8xf32>
    %80 = vector.shape_cast %79 : vector<8xf32> to vector<8x1xf32>
    %81 = vector.broadcast %80 : vector<8x1xf32> to vector<8x8xf32>
    %82 = arith.divf %78, %81 : vector<8x8xf32>
    %cst_44 = arith.constant dense<0.000000e+00> : vector<8x8xf32>
    %83 = tpu.matmul %82, %72, %cst_44 {dimension_numbers = #tpu.dot_dimension_numbers<[1], [0], [0], [1], [0, 0, 1, 1], [], []>} : vector<8x8xf32>, vector<8x8xf32>, vector<8x8xf32> -> vector<8x8xf32>
    %c24 = arith.constant 24 : index
    %c0_45 = arith.constant 0 : index
    %84 = vector.load %arg9[%c24, %c0_45] : memref<32x32xf32, #tpu.memory_space<vmem>>, vector<8x32xf32>
    %cst_46 = arith.constant dense<0.000000e+00> : vector<8x32xf32>
    %85 = tpu.matmul %83, %84, %cst_46 {dimension_numbers = #tpu.dot_dimension_numbers<[1], [0], [0], [1], [0, 0, 1, 1], [], []>} : vector<8x8xf32>, vector<8x32xf32>, vector<8x32xf32> -> vector<8x32xf32>
    %86 = arith.addf %69, %85 : vector<8x32xf32>
    %87 = tpu.concatenate %31, %48, %65, %82 in 1 : vector<8x8xf32>, vector<8x8xf32>, vector<8x8xf32>, vector<8x8xf32> -> vector<8x32xf32>
    %c0_47 = arith.constant 0 : index
    %c0_48 = arith.constant 0 : index
    %c0_49 = arith.constant 0 : index
    %88 = vector.load %arg12[%c0_47, %c0_48, %c0_49] : memref<1x8x32xf32, #tpu.memory_space<vmem>>, vector<1x8x32xf32>
    %89 = vector.shape_cast %88 : vector<1x8x32xf32> to vector<8x32xf32>
    %90 = vector.shape_cast %87 : vector<8x32xf32> to vector<1x8x32xf32>
    tpu.vector_store %arg12[%c0_47, %c0_48, %c0_49], %90 {strides = array<i32>} : memref<1x8x32xf32, #tpu.memory_space<vmem>>, vector<1x8x32xf32>,
    %c0_50 = arith.constant 0 : index
    %c0_51 = arith.constant 0 : index
    %91 = vector.load %arg10[%c0_50, %c0_51] : memref<1x32xf32, #tpu.memory_space<vmem>>, vector<1x32xf32>
    %92 = vector.broadcast %91 : vector<1x32xf32> to vector<8x32xf32>
    %93 = arith.addf %86, %92 : vector<8x32xf32>
    %c0_52 = arith.constant 0 : index
    %c0_53 = arith.constant 0 : index
    %c0_54 = arith.constant 0 : index
    %94 = vector.load %arg11[%c0_52, %c0_53, %c0_54] : memref<1x8x32xf32, #tpu.memory_space<vmem>>, vector<1x8x32xf32>
    %95 = vector.shape_cast %94 : vector<1x8x32xf32> to vector<8x32xf32>
    %96 = vector.shape_cast %93 : vector<8x32xf32> to vector<1x8x32xf32>
    tpu.vector_store %arg11[%c0_52, %c0_53, %c0_54], %96 {strides = array<i32>} : memref<1x8x32xf32, #tpu.memory_space<vmem>>, vector<1x8x32xf32>,
    return
  }
  func.func @transform_0(%arg0: i32) -> (i32, i32, i32) {
    %c0_i32 = arith.constant 0 : i32
    %c0_i32_0 = arith.constant 0 : i32
    %c0_i32_1 = arith.constant 0 : i32
    return %arg0, %c0_i32, %c0_i32_0 : i32, i32, i32
  }
  func.func @transform_1(%arg0: i32) -> (i32, i32, i32) {
    %c0_i32 = arith.constant 0 : i32
    %c0_i32_0 = arith.constant 0 : i32
    %c0_i32_1 = arith.constant 0 : i32
    return %arg0, %c0_i32, %c0_i32_0 : i32, i32, i32
  }
  func.func @transform_2(%arg0: i32) -> (i32, i32, i32) {
    %c0_i32 = arith.constant 0 : i32
    %c0_i32_0 = arith.constant 0 : i32
    %c0_i32_1 = arith.constant 0 : i32
    return %arg0, %c0_i32, %c0_i32_0 : i32, i32, i32
  }
  func.func @transform_3(%arg0: i32) -> (i32, i32) {
    %c0_i32 = arith.constant 0 : i32
    %c0_i32_0 = arith.constant 0 : i32
    %c0_i32_1 = arith.constant 0 : i32
    return %c0_i32, %c0_i32_0 : i32, i32
  }
  func.func @transform_4(%arg0: i32) -> (i32, i32) {
    %c0_i32 = arith.constant 0 : i32
    %c0_i32_0 = arith.constant 0 : i32
    %c0_i32_1 = arith.constant 0 : i32
    return %c0_i32, %c0_i32_0 : i32, i32
  }
  func.func @transform_5(%arg0: i32) -> (i32, i32) {
    %c0_i32 = arith.constant 0 : i32
    %c0_i32_0 = arith.constant 0 : i32
    %c0_i32_1 = arith.constant 0 : i32
    return %c0_i32, %c0_i32_0 : i32, i32
  }
  func.func @transform_6(%arg0: i32) -> (i32, i32) {
    %c0_i32 = arith.constant 0 : i32
    %c0_i32_0 = arith.constant 0 : i32
    %c0_i32_1 = arith.constant 0 : i32
    return %c0_i32, %c0_i32_0 : i32, i32
  }
  func.func @transform_7(%arg0: i32) -> (i32, i32) {
    %c0_i32 = arith.constant 0 : i32
    %c0_i32_0 = arith.constant 0 : i32
    %c0_i32_1 = arith.constant 0 : i32
    return %c0_i32, %c0_i32_0 : i32, i32
  }
  func.func @transform_8(%arg0: i32) -> (i32, i32) {
    %c0_i32 = arith.constant 0 : i32
    %c0_i32_0 = arith.constant 0 : i32
    %c0_i32_1 = arith.constant 0 : i32
    return %c0_i32, %c0_i32_0 : i32, i32
  }
  func.func @transform_9(%arg0: i32) -> (i32, i32) {
    %c0_i32 = arith.constant 0 : i32
    %c0_i32_0 = arith.constant 0 : i32
    %c0_i32_1 = arith.constant 0 : i32
    return %c0_i32, %c0_i32_0 : i32, i32
  }
  func.func @transform_10(%arg0: i32) -> (i32, i32, i32) {
    %c0_i32 = arith.constant 0 : i32
    %c0_i32_0 = arith.constant 0 : i32
    %c0_i32_1 = arith.constant 0 : i32
    return %arg0, %c0_i32, %c0_i32_0 : i32, i32, i32
  }
  func.func @transform_11(%arg0: i32) -> (i32, i32, i32) {
    %c0_i32 = arith.constant 0 : i32
    %c0_i32_0 = arith.constant 0 : i32
    %c0_i32_1 = arith.constant 0 : i32
    return %arg0, %c0_i32, %c0_i32_0 : i32, i32, i32
  }
}

</mosaic_0001>

<bundles_post_ra>
// kernel: attention_layer_emb_test_forward.1
= control target key start
LH: loop header
LB: loop body
LE: loop exit
PB: predicated region body
PF: predicated region fallthrough
CT: control target
= control target key end

     0   :  { %17 = vsyncpa [#allocation3], 0  ;;  %s1632_s0 = inlined_call_operand.vmem [shape: f32[2,8,32], index: 0, kind: input, shape index: {}]   ;;  %s1633_s1 = inlined_call_operand.vmem [shape: f32[2,8,32], index: 1, kind: input, shape index: {}]   ;;  %s1634_s2 = inlined_call_operand.hbm [shape: f32[2,8,32], index: 2, kind: input, shape index: {}]   ;;  %s1635_s3 = inlined_call_operand.vmem [shape: f32[32,32], index: 3, kind: input, shape index: {}]   ;;  %s1636_s4 = inlined_call_operand.vmem [shape: f32[8,32], index: 4, kind: input, shape index: {}]   ;;  %s1637_s5 = inlined_call_operand.vmem [shape: f32[32,32], index: 5, kind: input, shape index: {}]   ;;  %s1638_s6 = inlined_call_operand.vmem [shape: f32[8,32], index: 6, kind: input, shape index: {}]   ;;  %s1639_s7 = inlined_call_operand.vmem [shape: f32[32,32], index: 7, kind: input, shape index: {}]   ;;  %s1640_s8 = inlined_call_operand.vmem [shape: f32[32,32], index: 8, kind: input, shape index: {}]   ;;  %s1641_s9 = inlined_call_operand.vmem [shape: f32[1,32], index: 9, kind: input, shape index: {}]   ;;  %s1642_s10 = inlined_call_operand.hbm [shape: f32[2,8,32], index: 10, kind: output, shape index: {0}]   ;;  %s1643_s11 = inlined_call_operand.vmem [shape: f32[2,8,32], index: 11, kind: output, shape index: {1}]  }
   0x1   :  { %19 = vsyncpa [#allocation3 + $0x1], 0 }
   0x2   :  { %20 = vsyncpa [#allocation4], 0 }
   0x3   :  { %22 = vsyncpa [#allocation4 + $0x1], 0  ;;  %s1373_s17 = smov 0   ;;  %s1375_s18 = smov 0  }
   0x4   :  { %s1377_s19 = smov 0   ;;  %s1379_s20 = smov 0  }
   0x5 LB: > { %1650 = sst [smem:[#allocation8_spill]] %s1293_s17  ;;  %s1394_s21 = sadd.s32 4294967295, %s1305_s20   ;;  %s1305_s20 = sphi %s1379_s20, %s1664_s20   ;;  %s1301_s19 = sphi %s1377_s19, %s1666_s19   ;;  %s1297_s18 = sphi %s1375_s18, %s1668_s18   ;;  %s1293_s17 = sphi %s1373_s17, %s1667_s17  }
   0x6   : > { %1651 = sst [smem:[#allocation9_spill]] %s1301_s19  ;;  %s1106_s22 = sadd.s32 4294967294, %s1305_s20  }
   0x7   : > { %s1398_s23 = sadd.s32 1, %s1305_s20   ;;  %s87_s24 = sadd.s32 1, %s1301_s19 }
   0x8   : > { %1652 = sst [smem:[#allocation10_spill]] %s1398_s23  ;;  %s84_s25 = ssub.s32 %s1305_s20, %s1398_s23 }
   0x9   : > { %p94_p0 = scmp.ne.s32.totalorder %s1301_s19, %s1297_s18  ;;  %p85_p1 = scmp.eq.s32.totalorder %s84_s25, 0 }
   0xa   : > { %p95_p2 = scmp.eq.s32.totalorder %s1305_s20, 0  ;;  %p100_p3 = scmp.ne.s32.totalorder %s1297_s18, %s1293_s17 }
   0xb   : > { %p101_p4 = scmp.eq.s32.totalorder %s1394_s21, 0  ;;  %p271_p7 = scmp.eq.s32.totalorder %s1394_s21, 1 }
   0xc   : > { %s1410_s26 = scalar_select %p85_p1, %s1301_s19, %s87_s24  }
   0xd   : > { %p1412_p5 = por %p95_p2, %p94_p0  ;;  %p1416_p6 = por %p101_p4, %p100_p3 }
   0xe   : > { %1653 = sst [smem:[#allocation11_spill]] %s1410_s26  ;;  %p277_p8 = scmp.eq.s32.totalorder %s1106_s22, 1 }
   0xf   : > { %p1152_p10 = scmp.lt.s32.totalorder %s1305_s20, 2  ;;  %p1423_p11 = por %p271_p7, %p94_p0 }
  0x10   : > { %p1427_p12 = por %p277_p8, %p100_p3  ;;  %s358_s12 = sand.u32 1, %s1301_s19  }
  0x11   : > { %s1110_s13 = sshll.u32 %s1305_s20, 3  ;;  %s1109_s14 = sshll.u32 %s358_s12, 3 }
  0x12   : > { %s1657_s30 = scalar_select %p1427_p12, 1, 0 }
  0x13   : > { %s366_s24 = scalar_lea.hbm %s1634_s2, %s1110_s13  ;;  %s362_s22 = scalar_lea.vmem [#allocation2], %s1109_s14 }
  0x14   : > { %1658 = sst [smem:[#allocation12_spill]] %s1657_s30  ;;  %s368_s25 = sshll.u32 %s366_s24, 4  ;;  %s369_s25 = int_to_ptr.hbm [resolvable:$true] %s368_s25 }
  0x15   : > { %s370_s26 = sshll.u32 %s362_s22, 4  ;;  %p1438_p13 = pnand %p1152_p10, %p1412_p5  ;;  %s371_s26 = int_to_ptr.vmem [resolvable:$true] %s370_s26 }
  0x16   : > { %p1111_p0 = scmp.ge.s32.totalorder %s1305_s20, 1  ;;  %p375_p1 = scmp.lt.s32.totalorder %s1305_s20, 3 }
  0x17   : > { %s359_s19 = scalar_lea.sflag [#allocation3], %s358_s12  ;;  %s1209_s30 = sshra.s32 %s369_s25, 4  ;;  %s1210_s30 = int_to_ptr.hbm [resolvable:$true] %s1209_s30 }
  0x18   : > { %s1211_s17 = scalar_lea.hbm %s1210_s30, 8  ;;  %p1213_p3 = pneg %p1438_p13 }
  0x19   : > { %p1212_p2 = scmp.ne.s32.totalorder %s1210_s30, %s1211_s17  ;;  %s1216_s27 = scalar_lea.hbm %s1634_s2, 16 }
  0x1a   : > { %p1217_p5 = scmp.lt.s32.totalorder %s1210_s30, %s1634_s2  ;;  %p1218_p8 = scmp.lt.s32.totalorder %s1216_s27, %s1211_s17 }
  0x1b   : > { %p1214_p4 = pnand %p1213_p3, %p1212_p2 }
  0x1c   : > { %p1219_p10 = por %p1218_p8, %p1217_p5 }
  0x1d   : > { %p1215_p7 = pneg %p1214_p4 }
  0x1f   : > { %p1220_p9 = pnand %p1219_p10, %p1215_p7 }
  0x21   : > { %1223 = shalt.err (!%p1220_p9)
}
  0x22   : > { %1147 = dma.hbm_to_vmem [thread:$0]  (!%p1438_p13), %s369_s25, 128, %s371_s26, %s359_s19  }
  0x23   : > { %p376_p2 = pnand %p1111_p0, %p375_p1 }
  0x24   : > { %s1459_s12 = sand.u32 (!%p376_p2), 1, %s1297_s18  }
  0x25   : > { %379 = sbr.rel (%p376_p2) target bundleno = 1388 (0x56c), region = 60  ;;  %s1649_s17 = sshll.u32 (!%p376_p2), %s1459_s12, 3 }
  0x26   : > { %s382_s30 = scalar_lea.sflag (!%p376_p2), [#allocation3], %s1459_s12  ;;  %s1465_s24 = scalar_lea.vmem (!%p376_p2), [#allocation2], %s1649_s17 }
  0x2a   : > { %1284 = dma.done.wait (%p1416_p6), %s382_s30, 128  }
  0x2b   : > { %1286 = vsyncadd (%p1416_p6), %s382_s30, 4294967168  ;;  %p437_p9 = scmp.lt.s32.totalorder %s1394_s21, 1  ;;  %v483_v0 = vld [vmem:[%s1637_s5 + $0x18] sm:$0xff]  ;;  %v482_v2 = vld [vmem:[%s1637_s5 + $0x10] sm:$0xff]  ;;  %vm455_vm0 = vcmask 261120   ;;  %vm537_vm1 = vcmask 64512  }
  0x2c   : > { %v453_v1 = vld [vmem:[%s1635_s3 + $0x18] sm:$0xff]  ;;  %500 = vmatpush.msra.mxu1 %v483_v0  ;;  %v452_v3 = vld [vmem:[%s1635_s3 + $0x10] sm:$0xff]  ;;  %v481_v4 = vld [vmem:[%s1637_s5 + $0x8] sm:$0xff]  ;;  %s1309_s14 = smov 104   ;;  %s1137_s27 = sshll.u32 %s1394_s21, 3 }
  0x2d   : > { %s438_s19 = scalar_select %p437_p9, %s1394_s21, 1  ;;  %471 = vmatpush.msra.mxu0 %v453_v1  ;;  %v451_v5 = vld [vmem:[%s1635_s3 + $0x8] sm:$0xff]  ;;  %v480_v6 = vld [vmem:[%s1637_s5] sm:$0xff]  ;;  %v512_v22 = vld [vmem:[%s1639_s7 + $0x18] sm:$0xff] }
  0x2e   : > { %501 = vmatpush.msra.mxu1 %v482_v2  ;;  %v450_v7 = vld [vmem:[%s1635_s3] sm:$0xff]  ;;  %v511_v23 = vld [vmem:[%s1639_s7 + $0x10] sm:$0xff]  ;;  %528 = vmatpush.msra.mxu2 %v512_v22  ;;  %v510_v24 = vld [vmem:[%s1639_s7 + $0x8] sm:$0xff]  ;;  %s966_s21 = scalar_lea.sflag [#allocation4], %s1459_s12 }
  0x2f   : > { %s1473_s23 = sshll.u32 %s438_s19, 3  ;;  %472 = vmatpush.msra.mxu0 %v452_v3  ;;  %v484_v10 = vld [vmem:[%s1638_s6] sm:$0xff] }
  0x30   : > { %s444_s13 = scalar_lea.vmem %s1633_s1, %s1473_s23  ;;  %s440_s17 = scalar_lea.vmem %s1632_s0, %s1473_s23  ;;  %502 = vmatpush.msra.mxu1 %v481_v4  ;;  %v454_v11 = vld [vmem:[%s1636_s4] sm:$0xff]  ;;  %529 = vmatpush.msra.mxu2 %v511_v23 }
  0x31   : > { %473 = vmatpush.msra.mxu0 %v451_v5  ;;  %v479_v8 = vld [vmem:[%s444_s13] sm:$0xff]  ;;  %s1308_s13 = smov 120   ;;  %s448_s22 = scalar_lea.vmem %s1643_s11, %s1473_s23 }
  0x32   : > { %v449_v9 = vld [vmem:[%s440_s17] sm:$0xff]  ;;  %503 = vmatpush.msra.mxu1 %v480_v6  ;;  %s1307_s17 = smov 112   ;;  %530 = vmatpush.msra.mxu2 %v510_v24 }
  0x33   : > { %474 = vmatpush.msra.mxu0 %v450_v7  ;;  %1118 = vmatmul.msk.f32.vlgmr.msra.gmra.mxu1 %vm455_vm0, %v479_v8  ;;  %v509_v25 = vld [vmem:[%s1639_s7] sm:$0xff] }
  0x34   : > { %1117 = vmatmul.msk.f32.vlgmr.msra.gmra.mxu0 %vm455_vm0, %v449_v9  ;;  %531 = vmatpush.msra.mxu2 %v509_v25  ;;  %v508_v26 = vld [vmem:[%s1465_s24] sm:$0xff]  ;;  %s1310_s24 = smov 8  }
  0x35   : > { %1119 = vmatmul.msk.f32.vlgmr.msra.gmra.mxu2 %vm455_vm0, %v508_v26  ;;  %v611_v35 = vld [vmem:[%s1640_s8] sm:$0xff] }
  0xb0   : > { %v505_v12 = vpop.f32.mrf.mxu1 }
  0xb1   : > { %v476_v13 = vpop.f32.mrf.mxu0  ;;  %v506_v14 = vadd.f32 %v505_v12, %v484_v10 }
  0xb2   : > { %v477_v15 = vadd.f32 %v476_v13, %v454_v11 }
  0xb3   : > { %740 = vrot.lane.b32.xlu2 %v506_v14, %s1307_s17  ;;  %614 = vrot.lane.b32.xlu1 %v506_v14, %s1308_s13 }
  0xb4   : > { %v536_v16 = vmul.f32 0.35355338, %v477_v15  ;;  %1120 = vmatpush.xpose.msk.msra.mxu3 %vm537_vm1, %v506_v14 }
  0xb7   : > { %1121 = vmatmul.msk.f32.vlgmr.msra.gmra.mxu3 %vm537_vm1, %v536_v16 }
  0xb8   : > { %v1546_v37 = vpop.f32.mrf.mxu2 }
  0xb9   : > { %606 = vmatpush.msrb.mxu3 %v1546_v37 }
  0xbb   : > { %843 = vrot.lane.b32.xlu2 %v506_v14, %s1309_s14  ;;  %612 = vrot.lane.b32.xlu1 %v536_v16, %s1308_s13 }
  0xbc   : > { %733 = vmatpush.msra.mxu3 %v611_v35 }
  0xc3   : > { %841 = vrot.lane.b32.xlu1 %v536_v16, %s1309_s14 }
 0x10d   : > { %v741_v18 = vpop.permute.xlu2 %740 }
 0x115   : > { %v844_v34 = vpop.permute.xlu2 %843 }
 0x125   : > { %v615_v17 = vpop.permute.xlu1 %614 }
 0x126   : > { %1123 = vmatpush.xpose.msk.msrb.mxu0 %vm537_vm1, %v615_v17 }
 0x12a   : > { %1128 = vmatpush.xpose.msk.msra.mxu0 %vm537_vm1, %v741_v18 }
 0x12d   : > { %v613_v19 = vpop.permute.xlu1 %612 }
 0x12e   : > { %1124 = vmatmul.msk.f32.vlgmr.msrb.gmra.mxu0 %vm537_vm1, %v613_v19 }
 0x135   : > { %v842_v58 = vpop.permute.xlu1 %841 }
 0x13a   : > { %v561_v20 = vpop.f32.mrf.mxu3 }
 0x13b   : > { %v564_v21 = vsel %vm537_vm1, %v561_v20, -inf }
 0x13c   : > { %565 = vmax.xlane.f32.xlu0 %v564_v21 }
 0x1ab   : > { %v637_v27 = vpop.f32.mrf.mxu0 }
 0x1ac   : > { %v640_v28 = vsel %vm537_vm1, %v637_v27, -inf }
 0x1ad   : > { %641 = vmax.xlane.f32.xlu2 %v640_v28 }
 0x1af   : > { %v566_v29 = vpop.xlane.xlu0 %565 }
 0x1b0   : > { %v567_v30 = vsub.f32 %v561_v20, %v566_v29 }
 0x1b2   : > { %v568_v31 = vmul.f32 1.442695, %v567_v30 }
 0x1b4   : > { %1193 = vpow2.f32 %v568_v31 }
 0x1ba   : > { %v1194_v32 = vpop.eup %1193 }
 0x1bb   : > { %v570_v33 = vsel %vm537_vm1, %v1194_v32, 0.0 }
 0x1bc   : > { %571 = vadd.xlane.f32.xlu0 %v570_v33 }
 0x1d0   : > { %738 = vrot.lane.b32.xlu0 %v536_v16, %s1307_s17 }
 0x220   : > { %v642_v36 = vpop.xlane.xlu2 %641 }
 0x221   : > { %v643_v38 = vsub.f32 %v637_v27, %v642_v36 }
 0x223   : > { %v644_v39 = vmul.f32 1.442695, %v643_v38 }
 0x225   : > { %1195 = vpow2.f32 %v644_v39 }
 0x22b   : > { %v1196_v40 = vpop.eup %1195 }
 0x22c   : > { %v646_v41 = vsel %vm537_vm1, %v1196_v40, 0.0 }
 0x22d   : > { %647 = vadd.xlane.f32.xlu2 %v646_v41 }
 0x22f   : > { %v572_v42 = vpop.xlane.xlu0 %571 }
 0x230   : > { %1197 = vrcp.f32 %v572_v42  ;;  %v584_v46 = vand.u32 2147483648, %v572_v42  ;;  %v582_v48 = vand.u32 2147483647, %v572_v42  ;;  %vm578_vm3 = vweird.f32 %v572_v42 }
 0x232   : > { %v585_v50 = vor.u32 1.1754944e-38, %v584_v46  ;;  %vm583_vm5 = vcmp.eq.f32.partialorder %v582_v48, 8.507059e+37 }
 0x236   : > { %v1198_v43 = vpop.eup %1197 }
 0x237   : > { %v574_v44 = vmul.f32 %v1198_v43, %v572_v42  ;;  %vm579_vm2 = vweird.f32 %v1198_v43 }
 0x238   : > { %vm580_vm4 = vmor %vm578_vm3, %vm579_vm2 }
 0x239   : > { %v575_v45 = vsub.f32 1.0, %v574_v44 }
 0x23b   : > { %v576_v47 = vmul.f32 %v1198_v43, %v575_v45 }
 0x23d   : > { %v577_v49 = vadd.f32 %v1198_v43, %v576_v47 }
 0x23f   : > { %v581_v51 = vsel %vm580_vm4, %v1198_v43, %v577_v49  ;;  %v919_v49 = vld [vmem:[%s1640_s8 + $0x18] sm:$0xff]  ;;  %vm954_vm4 = vcmask 130048  }
 0x240   : > { %v586_v52 = vsel %vm583_vm5, %v585_v50, %v581_v51  ;;  %v816_v50 = vld [vmem:[%s1640_s8 + $0x10] sm:$0xff]  ;;  %vm956_vm5 = vcmask 195584  }
 0x241   : > { %v1550_v53 = vmul.f32 %v1194_v32, %v586_v52 }
 0x242   : > { %v739_v54 = vpop.permute.xlu0 %738 }
 0x243   : > { %1122 = vmatmul.msk.f32.vlgmr.msrb.gmra.mxu3 %vm537_vm1, %v1550_v53  ;;  %1129 = vmatmul.msk.f32.vlgmr.msra.gmra.mxu0 %vm537_vm1, %v739_v54 }
 0x244   : > { %1132 = vmatpush.xpose.msk.msrb.mxu3 %vm537_vm1, %v844_v34  ;;  %v691_v34 = vld [vmem:[%s1640_s8 + $0x8] sm:$0xff] }
 0x245   : > { %710 = vmatpush.msrb.mxu2 %v691_v34 }
 0x247   : > { %835 = vmatpush.msra.mxu2 %v816_v50 }
 0x2a0   : > { %v648_v62 = vpop.xlane.xlu2 %647 }
 0x2a1   : > { %v660_v9 = vand.u32 2147483648, %v648_v62  ;;  %vm654_vm7 = vweird.f32 %v648_v62  ;;  %v658_v10 = vand.u32 2147483647, %v648_v62 }
 0x2a3   : > { %v661_v12 = vor.u32 1.1754944e-38, %v660_v9  ;;  %vm659_vm9 = vcmp.eq.f32.partialorder %v658_v10, 8.507059e+37 }
 0x2c0   : > { %v763_v55 = vpop.f32.mrf.mxu0 }
 0x2c1   : > { %v766_v56 = vsel %vm537_vm1, %v763_v55, -inf }
 0x2c2   : > { %767 = vmax.xlane.f32.xlu1 %v766_v56 }
 0x2c6   : > { %v608_v57 = vpop.f32.mrf.mxu3 }
 0x2c7   : > { %1127 = vmatmul.msk.f32.vlgmr.msra.gmra.mxu3 %vm537_vm1, %v608_v57 }
 0x2cf   : > { %1133 = vmatmul.msk.f32.vlgmr.msrb.gmra.mxu3 %vm537_vm1, %v842_v58 }
 0x335   : > { %v768_v59 = vpop.xlane.xlu1 %767 }
 0x336   : > { %v769_v60 = vsub.f32 %v763_v55, %v768_v59 }
 0x338   : > { %v770_v61 = vmul.f32 1.442695, %v769_v60 }
 0x33a   : > { %1199 = vpow2.f32 %v770_v61 }
 0x33b   : > { %1201 = vrcp.f32 %v648_v62 }
 0x340   : > { %v1200_v63 = vpop.eup %1199 }
 0x341   : > { %v772_v0 = vsel %vm537_vm1, %v1200_v63, 0.0  ;;  %v1202_v1 = vpop.eup %1201 }
 0x342   : > { %773 = vadd.xlane.f32.xlu2 %v772_v0  ;;  %v650_v2 = vmul.f32 %v1202_v1, %v648_v62  ;;  %vm655_vm6 = vweird.f32 %v1202_v1 }
 0x343   : > { %vm656_vm8 = vmor %vm654_vm7, %vm655_vm6 }
 0x344   : > { %v651_v4 = vsub.f32 1.0, %v650_v2 }
 0x346   : > { %v652_v5 = vmul.f32 %v1202_v1, %v651_v4 }
 0x348   : > { %v653_v8 = vadd.f32 %v1202_v1, %v652_v5 }
 0x34a   : > { %v1560_v3 = vpop.f32.mrf.mxu3  ;;  %v657_v11 = vsel %vm656_vm8, %v1202_v1, %v653_v8 }
 0x34b   : > { %v662_v13 = vsel %vm659_vm9, %v661_v12, %v657_v11 }
 0x34c   : > { %v663_v14 = vmul.f32 %v1196_v40, %v662_v13 }
 0x352   : > { %v866_v6 = vpop.f32.mrf.mxu3 }
 0x353   : > { %v869_v7 = vsel %vm537_vm1, %v866_v6, -inf }
 0x354   : > { %870 = vmax.xlane.f32.xlu0 %v869_v7 }
 0x35a   : > { %665 = vrot.lane.b32.xlu2 %v1546_v37, %s1308_s13  ;;  %s1311_s13 = smov 16  }
 0x362   : > { %944 = vrot.lane.b32.xlu2 %v663_v14, %s1310_s24 }
 0x368   : > { %893 = vrot.lane.b32.xlu0 %v1546_v37, %s1309_s14 }
 0x3b5   : > { %v774_v15 = vpop.xlane.xlu2 %773 }
 0x3b6   : > { %1203 = vrcp.f32 %v774_v15  ;;  %v786_v20 = vand.u32 2147483648, %v774_v15  ;;  %v784_v22 = vand.u32 2147483647, %v774_v15  ;;  %vm780_vm11 = vweird.f32 %v774_v15 }
 0x3b8   : > { %v787_v24 = vor.u32 1.1754944e-38, %v786_v20  ;;  %vm785_vm13 = vcmp.eq.f32.partialorder %v784_v22, 8.507059e+37 }
 0x3bc   : > { %v1204_v16 = vpop.eup %1203 }
 0x3bd   : > { %v776_v17 = vmul.f32 %v1204_v16, %v774_v15  ;;  %v666_v18 = vpop.permute.xlu2 %665  ;;  %vm781_vm10 = vweird.f32 %v1204_v16 }
 0x3be   : > { %686 = vmatpush.msrb.mxu1 %v666_v18  ;;  %vm782_vm12 = vmor %vm780_vm11, %vm781_vm10 }
 0x3bf   : > { %v777_v19 = vsub.f32 1.0, %v776_v17  ;;  %1125 = vmatmul.msk.f32.vlgmr.msrb.gmra.mxu1 %vm537_vm1, %v663_v14 }
 0x3c1   : > { %v778_v21 = vmul.f32 %v1204_v16, %v777_v19 }
 0x3c3   : > { %v779_v23 = vadd.f32 %v1204_v16, %v778_v21 }
 0x3c5   : > { %v783_v25 = vsel %vm782_vm12, %v1204_v16, %v779_v23  ;;  %v945_v51 = vpop.permute.xlu2 %944 }
 0x3c6   : > { %v788_v26 = vsel %vm785_vm13, %v787_v24, %v783_v25  ;;  %v953_v54 = vsel %vm537_vm1, %v1550_v53, %v945_v51 }
 0x3c7   : > { %v871_v27 = vpop.xlane.xlu0 %870  ;;  %v789_v28 = vmul.f32 %v1200_v63, %v788_v26  ;;  %v1192_v63 = vld [vmem:[%s1641_s9] ss:$0 sm:$0xff] }
 0x3c8   : > { %v872_v29 = vsub.f32 %v866_v6, %v871_v27 }
 0x3c9   : > { %947 = vrot.lane.b32.xlu0 %v789_v28, %s1311_s13  ;;  %s980_s13 = scalar_lea.hbm %s1642_s10, %s1137_s27  ;;  %s1259_s27 = scalar_lea.hbm %s1642_s10, 16 }
 0x3ca   : > { %v873_v30 = vmul.f32 1.442695, %v872_v29  ;;  %s984_s30 = sshll.u32 %s980_s13, 4  ;;  %s985_s30 = int_to_ptr.hbm [resolvable:$true] %s984_s30 }
 0x3cb   : > { %s1253_s19 = sshra.s32 %s985_s30, 4  ;;  %s1254_s19 = int_to_ptr.hbm [resolvable:$true] %s1253_s19 }
 0x3cc   : > { %1205 = vpow2.f32 %v873_v30  ;;  %s1255_s26 = scalar_lea.hbm %s1254_s19, 8  ;;  %p1260_p1 = scmp.lt.s32.totalorder %s1254_s19, %s1642_s10 }
 0x3cd   : > { %p1256_p6 = scmp.ne.s32.totalorder %s1254_s19, %s1255_s26  ;;  %p1261_p3 = scmp.lt.s32.totalorder %s1259_s27, %s1255_s26 }
 0x3cf   : > { %p1257_p13 = pnand %p1256_p6, %p1423_p11  ;;  %p1262_p4 = por %p1261_p3, %p1260_p1 }
 0x3d1   : > { %p1258_p0 = pneg %p1257_p13 }
 0x3d2   : > { %v1206_v31 = vpop.eup %1205 }
 0x3d3   : > { %v875_v32 = vsel %vm537_vm1, %v1206_v31, 0.0  ;;  %p1263_p7 = pnand %p1262_p4, %p1258_p0 }
 0x3d4   : > { %876 = vadd.xlane.f32.xlu1 %v875_v32 }
 0x3da   : > { %v894_v33 = vpop.permute.xlu0 %893 }
 0x3db   : > { %914 = vmatpush.msrb.mxu0 %v894_v33 }
 0x3ed   : > { %790 = vrot.lane.b32.xlu1 %v1546_v37, %s1307_s17  ;;  %s1312_s17 = smov 24  }
 0x43b   : > { %v948_v52 = vpop.permute.xlu0 %947 }
 0x43c   : > { %v688_v35 = vpop.f32.mrf.mxu1  ;;  %v955_v55 = vsel %vm954_vm4, %v953_v54, %v948_v52 }
 0x43d   : > { %1126 = vmatmul.msk.f32.vlgmr.msrb.gmra.mxu2 %vm537_vm1, %v688_v35 }
 0x447   : > { %v877_v36 = vpop.xlane.xlu1 %876 }
 0x448   : > { %1207 = vrcp.f32 %v877_v36  ;;  %v889_v41 = vand.u32 2147483648, %v877_v36  ;;  %v887_v43 = vand.u32 2147483647, %v877_v36  ;;  %vm883_vm15 = vweird.f32 %v877_v36 }
 0x44a   : > { %v890_v37 = vor.u32 1.1754944e-38, %v889_v41  ;;  %vm888_vm3 = vcmp.eq.f32.partialorder %v887_v43, 8.507059e+37 }
 0x44e   : > { %v1208_v38 = vpop.eup %1207 }
 0x44f   : > { %v879_v39 = vmul.f32 %v1208_v38, %v877_v36  ;;  %vm884_vm14 = vweird.f32 %v1208_v38 }
 0x450   : > { %vm885_vm2 = vmor %vm883_vm15, %vm884_vm14 }
 0x451   : > { %v880_v40 = vsub.f32 1.0, %v879_v39 }
 0x453   : > { %v881_v42 = vmul.f32 %v1208_v38, %v880_v40 }
 0x455   : > { %v882_v44 = vadd.f32 %v1208_v38, %v881_v42 }
 0x457   : > { %v886_v45 = vsel %vm885_vm2, %v1208_v38, %v882_v44 }
 0x458   : > { %v891_v46 = vsel %vm888_vm3, %v890_v37, %v886_v45 }
 0x459   : > { %v892_v47 = vmul.f32 %v1206_v31, %v891_v46 }
 0x45b   : > { %950 = vrot.lane.b32.xlu1 %v892_v47, %s1312_s17  ;;  %1134 = vmatmul.msk.f32.vlgmr.msrb.gmra.mxu0 %vm537_vm1, %v892_v47  ;;  %s1660_s17 = sshll.u32 %s1459_s12, 3 }
 0x45c   : > { %s430_s15 = scalar_lea.vmem [#allocation5], %s1660_s17 }
 0x45d   : > { %s982_s16 = sshll.u32 %s430_s15, 4  ;;  %s983_s16 = int_to_ptr.vmem [resolvable:$true] %s982_s16 }
 0x45f   : > { %v791_v48 = vpop.permute.xlu1 %790 }
 0x460   : > { %811 = vmatpush.msra.mxu1 %v791_v48 }
 0x461   : > { %1130 = vmatmul.msk.f32.vlgmr.msra.gmra.mxu1 %vm537_vm1, %v789_v28 }
 0x462   : > { %938 = vmatpush.msrb.mxu1 %v919_v49 }
 0x4c0   : > { %v712_v60 = vpop.f32.mrf.mxu2 }
 0x4c1   : > { %v736_v61 = vadd.f32 %v1560_v3, %v712_v60 }
 0x4cd   : > { %v951_v56 = vpop.permute.xlu1 %950 }
 0x4ce   : > { %v957_v57 = vsel %vm956_vm5, %v955_v55, %v951_v56 }
 0x4cf   : > { %958 = vst.msk [vmem:[%s448_s22] sm:$0xff] %vm455_vm0, %v957_v57 }
 0x4d8   : > { %v916_v58 = vpop.f32.mrf.mxu0 }
 0x4d9   : > { %1135 = vmatmul.msk.f32.vlgmr.msrb.gmra.mxu1 %vm537_vm1, %v916_v58 }
 0x4de   : > { %v813_v59 = vpop.f32.mrf.mxu1 }
 0x4df   : > { %1131 = vmatmul.msk.f32.vlgmr.msra.gmra.mxu2 %vm537_vm1, %v813_v59 }
 0x556   : > { %v940_v0 = vpop.f32.mrf.mxu1 }
 0x562   : > { %v837_v53 = vpop.f32.mrf.mxu2 }
 0x563   : > { %v840_v62 = vadd.f32 %v837_v53, %v736_v61 }
 0x565   : > { %v943_v1 = vadd.f32 %v940_v0, %v840_v62 }
 0x567   : > { %v963_v2 = vadd.f32 %v1192_v63, %v943_v1 }
 0x569   : > { %964 = vst.msk [vmem:[%s430_s15] sm:$0xff] %vm455_vm0, %v963_v2 }
 0x56a   : > { %1266 = shalt.err (!%p1263_p7)
}
 0x56b   : > { %1142 = dma.vmem_to_hbm [thread:$0]  (%p1423_p11), %s983_s16, 128, %s985_s30, %s966_s21  }
 0x56c PF: > { %s1661_s12 = sld [smem:[#allocation8_spill]]  ;;  %p1663_p5 = scmp.ge.s32.totalorder %s1305_s20, 2 }
 0x56e   : > { %p1149_p8 = pnand %p1663_p5, %p1427_p12 }
 0x570   : > { %p1150_p10 = pneg %p1149_p8 }
 0x572   : > { %s999_s14 = sand.u32 1, %s1661_s12  }
 0x573   : > { %s1000_s28 = scalar_lea.sflag [#allocation4], %s999_s14 }
 0x574   : > { %1288 = dma.done.wait (%p1150_p10), %s1000_s28, 128  }
 0x575   : > { %1290 = vsyncadd (%p1150_p10), %s1000_s28, 4294967168  ;;  %s1664_s20 = sld [smem:[#allocation10_spill]]  ;;  %s1667_s17 = smov %s1297_s18 }
 0x576   : > { %s1665_s15 = sld [smem:[#allocation9_spill]] }
 0x577   : > { %s1666_s19 = sld [smem:[#allocation11_spill]] }
 0x57b   : > { %p25_p2 = scmp.ge.s32.totalorder %s1664_s20, 4  }
 0x57c   : > { %s1668_s18 = smov %s1665_s15 }
 0x57d   :  { %27 = sbr.rel (!%p25_p2) target bundleno = 5 (0x5), region = 123 }
 0x582   :  { %1013 = vsyncpa [#allocation3], 1 }
 0x583   :  { %1015 = vsyncpa [#allocation3 + $0x1], 1 }
 0x584   :  { %1016 = vsyncpa [#allocation4], 1 }
 0x585   :  { %1018 = vsyncpa [#allocation4 + $0x1], 1 }

</bundles_post_ra>
